<compile_context>
chip_gen: v7x
topology: tpu7x:2x2x1
jax: 0.10.0
libtpu: 0.0.40
codegen_flags: <defaults>
</compile_context>

<pallas_src>
import jax
import jax.numpy as jnp
from jax.experimental import pallas as pl
from jax.experimental.pallas import tpu as pltpu


def _ca_layer_kernel(x_ref, w1_ref, b1_ref, w2_ref, b2_ref, o_ref):
    """One image per grid step.

    x_ref  : (1, HW, C)  image, channels on the lane axis (VMEM)
    w1_ref : (Cr, C)     squeeze 1x1-conv weight (conv1.weight[:, :, 0, 0])
    b1_ref : (Cr, 1)     squeeze bias
    w2_ref : (Cr, C)     excite 1x1-conv weight (conv2.weight[:, :, 0, 0].T)
    b2_ref : (1, C)      excite bias
    o_ref  : (1, HW, C)  x * channel_gate
    """
    x = x_ref[0]                                              # (HW, C) f32

    # AdaptiveAvgPool2d(1): global mean over the spatial (sublane) axis.
    pooled = jnp.mean(x, axis=0, keepdims=True)               # (1, C)

    # 1x1 conv C -> Cr (+bias) + ReLU.  M=1 matmul -> weighted lane reduction
    # (VPU multiply + XLU lane-sum) instead of a tiny MXU push/pop.
    h = jnp.sum(w1_ref[...] * pooled, axis=1, keepdims=True)  # (Cr, 1)
    h = jnp.maximum(h + b1_ref[...], 0.0)

    # 1x1 conv Cr -> C (+bias) + Sigmoid: weighted sublane reduction.
    g = jnp.sum(h * w2_ref[...], axis=0, keepdims=True)       # (1, C)
    g = g + b2_ref[...]
    gate = 1.0 / (1.0 + jnp.exp(-g))                          # sigmoid, EUP

    # Channel-wise rescale of the full tile (lane-dense store, C = 128).
    o_ref[0] = (x * gate).astype(o_ref.dtype)


def ca_layer(x_nchw, w1_oihw, b1, w2_oihw, b2):
    """CALayer forward: x * sigmoid(conv2(relu(conv1(avg_pool(x))))).

    x_nchw  : (N, C, H, W)
    w1_oihw : (Cr, C, 1, 1)   b1 : (Cr,)     (squeeze conv)
    w2_oihw : (C, Cr, 1, 1)   b2 : (C,)      (excite conv)
    Returns (N, C, H, W).
    """
    N, C, H, W = x_nchw.shape
    Cr = w1_oihw.shape[0]
    HW = H * W

    # Layout glue in plain JAX: channels-last, spatial flattened -> the kernel
    # sees a lane-dense (HW, C) tile per image with zero in-kernel reshapes.
    x = jnp.transpose(x_nchw, (0, 2, 3, 1)).reshape(N, HW, C)

    w1 = w1_oihw[:, :, 0, 0].astype(jnp.float32)              # (Cr, C) lane-dense
    w2 = jnp.transpose(w2_oihw[:, :, 0, 0]).astype(jnp.float32)  # (Cr, C) lane-dense
    b1c = b1.reshape(Cr, 1).astype(jnp.float32)
    b2c = b2.reshape(1, C).astype(jnp.float32)

    # TODO(synk): for very large H*W the per-image block would need a spatial
    # row-tile grid axis plus a two-pass (sum, then scale) pooling; not needed
    # at these shapes (one image block is HW*C*4 B = 128 KiB).
    out = pl.pallas_call(
        _ca_layer_kernel,
        out_shape=jax.ShapeDtypeStruct((N, HW, C), x_nchw.dtype),
        grid_spec=pltpu.PrefetchScalarGridSpec(
            num_scalar_prefetch=0,
            grid=(N,),
            in_specs=[
                pl.BlockSpec((1, HW, C), lambda n: (n, 0, 0)),
                pl.BlockSpec((Cr, C), lambda n: (0, 0)),
                pl.BlockSpec((Cr, 1), lambda n: (0, 0)),
                pl.BlockSpec((Cr, C), lambda n: (0, 0)),
                pl.BlockSpec((1, C), lambda n: (0, 0)),
            ],
            out_specs=pl.BlockSpec((1, HW, C), lambda n: (n, 0, 0)),
        ),
        compiler_params=pltpu.CompilerParams(
            dimension_semantics=("parallel",)),
    )(x, w1, b1c, w2, b2c)

    return jnp.transpose(out.reshape(N, H, W, C), (0, 3, 1, 2))


if __name__ == "__main__":
    key = jax.random.PRNGKey(0)
    k_x, k_w1, k_b1, k_w2, k_b2 = jax.random.split(key, 5)

    # Small shapes consistent with CALayer(channel, reduction=16):
    # channel must be a multiple of the reduction, and C=128 keeps the lane
    # axis dense (exactly one full 128-lane vreg row).
    N, C, H, W = 2, 128, 16, 16
    reduction = 16
    Cr = C // reduction  # 8

    x = jax.random.normal(k_x, (N, C, H, W), dtype=jnp.float32)

    # Deterministic Kaiming-uniform-ish init (exact distribution not required).
    bound1 = (1.0 / C) ** 0.5
    w1 = jax.random.uniform(k_w1, (Cr, C, 1, 1), jnp.float32, -bound1, bound1)
    b1 = jax.random.uniform(k_b1, (Cr,), jnp.float32, -bound1, bound1)
    bound2 = (1.0 / Cr) ** 0.5
    w2 = jax.random.uniform(k_w2, (C, Cr, 1, 1), jnp.float32, -bound2, bound2)
    b2 = jax.random.uniform(k_b2, (C,), jnp.float32, -bound2, bound2)

    out = ca_layer(x, w1, b1, w2, b2)
    out = jax.block_until_ready(out)

    # Pure-JAX reference (same math as CALayer.forward).
    y = jnp.mean(x, axis=(2, 3), keepdims=True)                       # (N,C,1,1)
    h = jnp.einsum("nchw,dc->ndhw", y, w1[:, :, 0, 0]) + b1.reshape(1, Cr, 1, 1)
    h = jnp.maximum(h, 0.0)
    g = jnp.einsum("ndhw,cd->nchw", h, w2[:, :, 0, 0]) + b2.reshape(1, C, 1, 1)
    ref = x * jax.nn.sigmoid(g)

    assert out.shape == x.shape
    assert jnp.allclose(out, ref, atol=1e-5, rtol=1e-5)

    print("KERNEL_OK")
</pallas_src>

<mosaic_0001>
module attributes {stable_mosaic.version = 11 : i64} {
  func.func @_ca_layer_kernel(%arg0: i32, %arg1: memref<1x256x128xf32, #tpu.memory_space<vmem>>, %arg2: memref<8x128xf32, #tpu.memory_space<vmem>>, %arg3: memref<8x1xf32, #tpu.memory_space<vmem>>, %arg4: memref<8x128xf32, #tpu.memory_space<vmem>>, %arg5: memref<1x128xf32, #tpu.memory_space<vmem>>, %arg6: memref<1x256x128xf32, #tpu.memory_space<vmem>>) attributes {dimension_semantics = [#tpu.dimension_semantics<parallel>], iteration_bounds = array<i64: 2>, scalar_prefetch = 0 : i64, scratch_operands = 0 : i64, tpu.core_type = #tpu.core_type<tc>, window_params = [{transform_indices = @transform_0, window_bounds = array<i64: 1, 256, 128>}, {pipeline_mode = #tpu.pipeline_mode<synchronous>, transform_indices = @transform_1, window_bounds = array<i64: 8, 128>}, {pipeline_mode = #tpu.pipeline_mode<synchronous>, transform_indices = @transform_2, window_bounds = array<i64: 8, 1>}, {pipeline_mode = #tpu.pipeline_mode<synchronous>, transform_indices = @transform_3, window_bounds = array<i64: 8, 128>}, {pipeline_mode = #tpu.pipeline_mode<synchronous>, transform_indices = @transform_4, window_bounds = array<i64: 1, 128>}, {transform_indices = @transform_5, window_bounds = array<i64: 1, 256, 128>}]} {
    %c0 = arith.constant 0 : index
    %c0_0 = arith.constant 0 : index
    %c0_1 = arith.constant 0 : index
    %0 = vector.load %arg1[%c0, %c0_0, %c0_1] : memref<1x256x128xf32, #tpu.memory_space<vmem>>, vector<1x256x128xf32>
    %1 = vector.shape_cast %0 : vector<1x256x128xf32> to vector<256x128xf32>
    %cst = arith.constant dense<0.000000e+00> : vector<128xf32>
    %2 = vector.multi_reduction <add>, %1, %cst [0] : vector<256x128xf32> to vector<128xf32>
    %3 = vector.shape_cast %2 : vector<128xf32> to vector<1x128xf32>
    %cst_2 = arith.constant 2.560000e+02 : f32
    %4 = vector.broadcast %cst_2 : f32 to vector<1x128xf32>
    %5 = arith.divf %3, %4 : vector<1x128xf32>
    %c0_3 = arith.constant 0 : index
    %c0_4 = arith.constant 0 : index
    %6 = vector.load %arg2[%c0_3, %c0_4] : memref<8x128xf32, #tpu.memory_space<vmem>>, vector<8x128xf32>
    %7 = vector.broadcast %5 : vector<1x128xf32> to vector<8x128xf32>
    %8 = arith.mulf %6, %7 : vector<8x128xf32>
    %cst_5 = arith.constant dense<0.000000e+00> : vector<8xf32>
    %9 = vector.multi_reduction <add>, %8, %cst_5 [1] : vector<8x128xf32> to vector<8xf32>
    %10 = vector.shape_cast %9 : vector<8xf32> to vector<8x1xf32>
    %c0_6 = arith.constant 0 : index
    %c0_7 = arith.constant 0 : index
    %11 = vector.load %arg3[%c0_6, %c0_7] : memref<8x1xf32, #tpu.memory_space<vmem>>, vector<8x1xf32>
    %12 = arith.addf %10, %11 : vector<8x1xf32>
    %cst_8 = arith.constant 0.000000e+00 : f32
    %13 = vector.broadcast %cst_8 : f32 to vector<8x1xf32>
    %14 = arith.maximumf %12, %13 : vector<8x1xf32>
    %c0_9 = arith.constant 0 : index
    %c0_10 = arith.constant 0 : index
    %15 = vector.load %arg4[%c0_9, %c0_10] : memref<8x128xf32, #tpu.memory_space<vmem>>, vector<8x128xf32>
    %16 = vector.broadcast %14 : vector<8x1xf32> to vector<8x128xf32>
    %17 = arith.mulf %16, %15 : vector<8x128xf32>
    %cst_11 = arith.constant dense<0.000000e+00> : vector<128xf32>
    %18 = vector.multi_reduction <add>, %17, %cst_11 [0] : vector<8x128xf32> to vector<128xf32>
    %19 = vector.shape_cast %18 : vector<128xf32> to vector<1x128xf32>
    %c0_12 = arith.constant 0 : index
    %c0_13 = arith.constant 0 : index
    %20 = vector.load %arg5[%c0_12, %c0_13] : memref<1x128xf32, #tpu.memory_space<vmem>>, vector<1x128xf32>
    %21 = arith.addf %19, %20 : vector<1x128xf32>
    %cst_14 = arith.constant 0.000000e+00 : f32
    %22 = vector.broadcast %cst_14 : f32 to vector<1x128xf32>
    %23 = arith.subf %22, %21 : vector<1x128xf32>
    %24 = math.exp %23 : vector<1x128xf32>
    %cst_15 = arith.constant 1.000000e+00 : f32
    %25 = vector.broadcast %cst_15 : f32 to vector<1x128xf32>
    %26 = arith.addf %25, %24 : vector<1x128xf32>
    %cst_16 = arith.constant 1.000000e+00 : f32
    %27 = vector.broadcast %cst_16 : f32 to vector<1x128xf32>
    %28 = arith.divf %27, %26 : vector<1x128xf32>
    %29 = vector.broadcast %28 : vector<1x128xf32> to vector<256x128xf32>
    %30 = arith.mulf %1, %29 : vector<256x128xf32>
    %c0_17 = arith.constant 0 : index
    %c0_18 = arith.constant 0 : index
    %c0_19 = arith.constant 0 : index
    %31 = vector.load %arg6[%c0_17, %c0_18, %c0_19] : memref<1x256x128xf32, #tpu.memory_space<vmem>>, vector<1x256x128xf32>
    %32 = vector.shape_cast %31 : vector<1x256x128xf32> to vector<256x128xf32>
    %33 = vector.shape_cast %30 : vector<256x128xf32> to vector<1x256x128xf32>
    tpu.vector_store %arg6[%c0_17, %c0_18, %c0_19], %33 {strides = array<i32>} : memref<1x256x128xf32, #tpu.memory_space<vmem>>, vector<1x256x128xf32>,
    return
  }
  func.func @transform_0(%arg0: i32) -> (i32, i32, i32) {
    %c0_i32 = arith.constant 0 : i32
    %c0_i32_0 = arith.constant 0 : i32
    %c0_i32_1 = arith.constant 0 : i32
    return %arg0, %c0_i32, %c0_i32_0 : i32, i32, i32
  }
  func.func @transform_1(%arg0: i32) -> (i32, i32) {
    %c0_i32 = arith.constant 0 : i32
    %c0_i32_0 = arith.constant 0 : i32
    %c0_i32_1 = arith.constant 0 : i32
    return %c0_i32, %c0_i32_0 : i32, i32
  }
  func.func @transform_2(%arg0: i32) -> (i32, i32) {
    %c0_i32 = arith.constant 0 : i32
    %c0_i32_0 = arith.constant 0 : i32
    %c0_i32_1 = arith.constant 0 : i32
    return %c0_i32, %c0_i32_0 : i32, i32
  }
  func.func @transform_3(%arg0: i32) -> (i32, i32) {
    %c0_i32 = arith.constant 0 : i32
    %c0_i32_0 = arith.constant 0 : i32
    %c0_i32_1 = arith.constant 0 : i32
    return %c0_i32, %c0_i32_0 : i32, i32
  }
  func.func @transform_4(%arg0: i32) -> (i32, i32) {
    %c0_i32 = arith.constant 0 : i32
    %c0_i32_0 = arith.constant 0 : i32
    %c0_i32_1 = arith.constant 0 : i32
    return %c0_i32, %c0_i32_0 : i32, i32
  }
  func.func @transform_5(%arg0: i32) -> (i32, i32, i32) {
    %c0_i32 = arith.constant 0 : i32
    %c0_i32_0 = arith.constant 0 : i32
    %c0_i32_1 = arith.constant 0 : i32
    return %arg0, %c0_i32, %c0_i32_0 : i32, i32, i32
  }
}

</mosaic_0001>

<bundles_post_ra>
// kernel: tpu_custom_call.1
= control target key start
LH: loop header
LB: loop body
LE: loop exit
PB: predicated region body
PF: predicated region fallthrough
CT: control target
= control target key end

     0   :  { %10 = vsyncpa [#allocation3], 0  ;;  %s1079_s0 = inlined_call_operand.hbm [shape: f32[2,256,128], index: 0, kind: input, shape index: {}]   ;;  %s1080_s1 = inlined_call_operand.vmem [shape: f32[8,128], index: 1, kind: input, shape index: {}]   ;;  %s1081_s2 = inlined_call_operand.vmem [shape: f32[8,1], index: 2, kind: input, shape index: {}]   ;;  %s1082_s3 = inlined_call_operand.vmem [shape: f32[8,128], index: 3, kind: input, shape index: {}]   ;;  %s1083_s4 = inlined_call_operand.vmem [shape: f32[1,128], index: 4, kind: input, shape index: {}]   ;;  %s1084_s5 = inlined_call_operand.hbm [shape: f32[2,256,128], index: 5, kind: output, shape index: {}]  }
   0x1   :  { %12 = vsyncpa [#allocation3 + $0x1], 0 }
   0x2   :  { %13 = vsyncpa [#allocation4], 0 }
   0x3   :  { %15 = vsyncpa [#allocation4 + $0x1], 0  ;;  %s704_s18 = smov 0   ;;  %s706_s19 = smov 0  }
   0x4   :  { %s708_s20 = smov 0   ;;  %s710_s21 = smov 0  }
   0x5 LB: > { %s725_s22 = sadd.s32 4294967295, %s665_s21   ;;  %s497_s23 = sadd.s32 4294967294, %s665_s21   ;;  %s665_s21 = sphi %s710_s21, %s1097_s21   ;;  %s661_s20 = sphi %s708_s20, %s1096_s20   ;;  %s657_s19 = sphi %s706_s19, %s1095_s19   ;;  %s653_s18 = sphi %s704_s18, %s1094_s18  }
   0x6   : > { %s729_s24 = sadd.s32 1, %s665_s21   ;;  %s28_s25 = sadd.s32 1, %s661_s20 }
   0x7   : > { %s25_s26 = ssub.s32 %s665_s21, %s729_s24  ;;  %p35_p0 = scmp.ne.s32.totalorder %s661_s20, %s657_s19 }
   0x8   : > { %p26_p1 = scmp.eq.s32.totalorder %s25_s26, 0  ;;  %p36_p2 = scmp.eq.s32.totalorder %s665_s21, 0 }
   0x9   : > { %p41_p3 = scmp.ne.s32.totalorder %s657_s19, %s653_s18  ;;  %p42_p4 = scmp.eq.s32.totalorder %s725_s22, 0 }
   0xa   : > { %s741_s27 = scalar_select %p26_p1, %s661_s20, %s28_s25  }
   0xb   : > { %p743_p5 = por %p36_p2, %p35_p0  ;;  %p747_p6 = por %p42_p4, %p41_p3 }
   0xc   : > { %p149_p7 = scmp.eq.s32.totalorder %s725_s22, 1  ;;  %p155_p8 = scmp.eq.s32.totalorder %s497_s23, 1 }
   0xd   : > { %p525_p10 = scmp.lt.s32.totalorder %s665_s21, 2  ;;  %s187_s7 = sand.u32 1, %s661_s20  }
   0xe   : > { %p754_p11 = por %p149_p7, %p35_p0  ;;  %p758_p12 = por %p155_p8, %p41_p3 }
   0xf   : > { %s511_s8 = sshll.u32 %s665_s21, 12  ;;  %s500_s9 = sshll.u32 %s187_s7, 8 }
  0x10   : > { %s1088_s30 = scalar_select %p754_p11, 1, 0 }
  0x11   : > { %s1089_s6 = scalar_select %p758_p12, 1, 0 }
  0x12   : > { %s767_s12 = scalar_lea.hbm %s1079_s0, %s511_s8  ;;  %s191_s13 = scalar_lea.vmem [#allocation2], %s500_s9 }
  0x13   : > { %s198_s14 = sshll.u32 %s191_s13, 4  ;;  %p771_p13 = pnand %p525_p10, %p743_p5  ;;  %s775_s14 = int_to_ptr.vmem [resolvable:$true] %s198_s14 }
  0x14   : > { %s777_s16 = scalar_lea.sflag [#allocation3], %s187_s7  ;;  %s569_s17 = scalar_lea.hbm %s767_s12, 4096 }
  0x15   : > { %p570_p0 = scmp.ne.s32.totalorder %s767_s12, %s569_s17  ;;  %p571_p1 = pneg %p771_p13 }
  0x16   : > { %s574_s26 = scalar_lea.hbm %s1079_s0, 8192  ;;  %p575_p4 = scmp.lt.u32.totalorder %s767_s12, %s1079_s0 }
  0x17   : > { %p572_p2 = pnand %p571_p1, %p570_p0  ;;  %p576_p5 = scmp.lt.u32.totalorder %s574_s26, %s569_s17 }
  0x18   : > { %p578_p8 = scmp.lt.u32.totalorder %s569_s17, %s767_s12 }
  0x19   : > { %p573_p3 = pneg %p572_p2  ;;  %p577_p7 = por %p576_p5, %p575_p4 }
  0x1b   : > { %p579_p10 = por %p578_p8, %p577_p7 }
  0x1d   : > { %p580_p9 = pnand %p579_p10, %p573_p3 }
  0x1f   : > { %583 = shalt.err (!%p580_p9)
}
  0x20   : > { %s584_s7 = scalar_lea.vmem %s775_s14, 4096  ;;  %s667_s9 = smov [#allocation2]  }
  0x21   : > { %p585_p0 = scmp.ne.s32.totalorder %s775_s14, %s584_s7  ;;  %s589_s10 = sshll.u32 %s667_s9, 4  ;;  %s590_s10 = int_to_ptr.vmem [resolvable:$false] %s589_s10 }
  0x22   : > { %s591_s11 = scalar_lea.vmem %s590_s10, 8192  ;;  %p592_p11 = scmp.lt.s32.totalorder %s775_s14, %s590_s10 }
  0x23   : > { %p587_p2 = pnand %p585_p0, %p571_p1  ;;  %p593_p4 = scmp.lt.s32.totalorder %s591_s11, %s584_s7 }
  0x25   : > { %p588_p12 = pneg %p587_p2  ;;  %p594_p5 = por %p593_p4, %p592_p11 }
  0x27   : > { %p595_p7 = pnand %p594_p5, %p588_p12 }
  0x29   : > { %598 = shalt.err (!%p595_p7)
}
  0x2a   : > { %s668_s13 = smov 128   ;;  %s669_s17 = smov 8  }
  0x2b   : > { %520 = dma.hbm_to_vmem [thread:$0]  (!%p771_p13), %s767_s12, 4096, %s775_s14, %s777_s16, %s668_s13, %s668_s13, %s669_s17  }
  0x2c   : > { %p503_p9 = scmp.ge.s32.totalorder %s665_s21, 1  ;;  %p206_p1 = scmp.lt.s32.totalorder %s665_s21, 3 }
  0x2e   : > { %p207_p3 = pnand %p503_p9, %p206_p1 }
  0x2f   : > { %s808_s23 = sand.u32 (!%p207_p3), 1, %s657_s19  }
  0x30   : > { %210 = sbr.rel (%p207_p3) target bundleno = 488 (0x1e8), region = 40  ;;  %s504_s25 = sshll.u32 (!%p207_p3), %s808_s23, 8 }
  0x31   : > { %s213_s26 = scalar_lea.sflag (!%p207_p3), [#allocation3], %s808_s23  ;;  %s814_s28 = scalar_lea.vmem (!%p207_p3), [#allocation2], %s504_s25 }
  0x37   : > { %644 = dma.done.wait (%p747_p6), %s213_s26, 4096  }
  0x38   : > { %646 = vsyncadd (%p747_p6), %s213_s26, 4294963200  ;;  %v821_v0 = vld [vmem:[%s814_s28] sm:$0xff]  ;;  %v824_v1 = vld [vmem:[%s814_s28 + $0x8] sm:$0xff]  ;;  %s974_s10 = scalar_lea.vmem [#allocation5], %s504_s25  ;;  %s512_s11 = sshll.u32 %s725_s22, 12 }
  0x39   : > { %v827_v2 = vld [vmem:[%s814_s28 + $0x10] sm:$0xff]  ;;  %v275_v3 = vadd.f32 %v824_v1, %v821_v0  ;;  %v832_v4 = vld [vmem:[%s814_s28 + $0x18] sm:$0xff]  ;;  %v836_v6 = vld [vmem:[%s814_s28 + $0x20] sm:$0xff]  ;;  %s424_s13 = sshll.u32 %s974_s10, 4  ;;  %s1017_s25 = scalar_lea.hbm %s1084_s5, %s512_s11  ;;  %s1019_s13 = int_to_ptr.vmem [resolvable:$true] %s424_s13 }
  0x3a   : > { %v840_v8 = vld [vmem:[%s814_s28 + $0x28] sm:$0xff]  ;;  %v844_v10 = vld [vmem:[%s814_s28 + $0x30] sm:$0xff]  ;;  %v848_v12 = vld [vmem:[%s814_s28 + $0x38] sm:$0xff]  ;;  %s411_s26 = scalar_lea.sflag [#allocation4], %s808_s23  ;;  %p1091_p11 = scmp.ne.s32.totalorder %s1088_s30, 0 }
  0x3b   : > { %v276_v5 = vadd.f32 %v275_v3, %v827_v2  ;;  %v852_v14 = vld [vmem:[%s814_s28 + $0x40] sm:$0xff]  ;;  %v856_v16 = vld [vmem:[%s814_s28 + $0x48] sm:$0xff]  ;;  %v860_v18 = vld [vmem:[%s814_s28 + $0x50] sm:$0xff]  ;;  %s671_s29 = smov [#allocation5]  }
  0x3c   : > { %v864_v20 = vld [vmem:[%s814_s28 + $0x58] sm:$0xff]  ;;  %v868_v22 = vld [vmem:[%s814_s28 + $0x60] sm:$0xff]  ;;  %v872_v24 = vld [vmem:[%s814_s28 + $0x68] sm:$0xff]  ;;  %s603_s12 = sshll.u32 %s671_s29, 4  ;;  %s604_s12 = int_to_ptr.vmem [resolvable:$false] %s603_s12 }
  0x3d   : > { %v277_v7 = vadd.f32 %v276_v5, %v832_v4  ;;  %v876_v26 = vld [vmem:[%s814_s28 + $0x70] sm:$0xff]  ;;  %v880_v28 = vld [vmem:[%s814_s28 + $0x78] sm:$0xff]  ;;  %v884_v30 = vld [vmem:[%s814_s28 + $0x80] sm:$0xff]  ;;  %s605_s14 = scalar_lea.vmem %s604_s12, 8192  ;;  %p606_p8 = scmp.lt.s32.totalorder %s1019_s13, %s604_s12 }
  0x3e   : > { %v888_v32 = vld [vmem:[%s814_s28 + $0x88] sm:$0xff]  ;;  %v892_v34 = vld [vmem:[%s814_s28 + $0x90] sm:$0xff]  ;;  %v896_v36 = vld [vmem:[%s814_s28 + $0x98] sm:$0xff] }
  0x3f   : > { %v278_v9 = vadd.f32 %v277_v7, %v836_v6  ;;  %v900_v38 = vld [vmem:[%s814_s28 + $0xa0] sm:$0xff]  ;;  %v904_v40 = vld [vmem:[%s814_s28 + $0xa8] sm:$0xff]  ;;  %v908_v42 = vld [vmem:[%s814_s28 + $0xb0] sm:$0xff] }
  0x40   : > { %v912_v44 = vld [vmem:[%s814_s28 + $0xb8] sm:$0xff]  ;;  %v916_v46 = vld [vmem:[%s814_s28 + $0xc0] sm:$0xff]  ;;  %v920_v48 = vld [vmem:[%s814_s28 + $0xc8] sm:$0xff] }
  0x41   : > { %v279_v11 = vadd.f32 %v278_v9, %v840_v8  ;;  %v924_v50 = vld [vmem:[%s814_s28 + $0xd0] sm:$0xff]  ;;  %v928_v52 = vld [vmem:[%s814_s28 + $0xd8] sm:$0xff]  ;;  %v932_v54 = vld [vmem:[%s814_s28 + $0xe0] sm:$0xff] }
  0x42   : > { %v936_v56 = vld [vmem:[%s814_s28 + $0xe8] sm:$0xff]  ;;  %v940_v58 = vld [vmem:[%s814_s28 + $0xf0] sm:$0xff]  ;;  %v944_v60 = vld [vmem:[%s814_s28 + $0xf8] sm:$0xff]  ;;  %s599_s28 = scalar_lea.vmem %s1019_s13, 4096 }
  0x43   : > { %v280_v13 = vadd.f32 %v279_v11, %v844_v10  ;;  %p600_p6 = scmp.ne.s32.totalorder %s1019_s13, %s599_s28  ;;  %p607_p10 = scmp.lt.s32.totalorder %s605_s14, %s599_s28 }
  0x45   : > { %v281_v15 = vadd.f32 %v280_v13, %v848_v12  ;;  %v314_v13 = vld [vmem:[%s1080_s1] sm:$0xff]  ;;  %p601_p12 = pnand %p600_p6, %p1091_p11  ;;  %p608_p0 = por %p607_p10, %p606_p8 }
  0x47   : > { %v282_v17 = vadd.f32 %v281_v15, %v852_v14  ;;  %p602_p13 = pneg %p601_p12 }
  0x49   : > { %v283_v19 = vadd.f32 %v282_v17, %v856_v16  ;;  %p609_p2 = pnand %p608_p0, %p602_p13 }
  0x4b   : > { %v284_v21 = vadd.f32 %v283_v19, %v860_v18  ;;  %v670_v19 = vmov 0  }
  0x4c   : > { %564 = vset.pattern.permute.xlu0 %v670_v19 }
  0x4d   : > { %v285_v23 = vadd.f32 %v284_v21, %v864_v20  ;;  %v318_v21 = vld [vmem:[%s1081_s2] sm:$0xff] }
  0x4f   : > { %v286_v25 = vadd.f32 %v285_v23, %v868_v22 }
  0x51   : > { %v287_v27 = vadd.f32 %v286_v25, %v872_v24 }
  0x53   : > { %v288_v29 = vadd.f32 %v287_v27, %v876_v26 }
  0x55   : > { %v289_v31 = vadd.f32 %v288_v29, %v880_v28  ;;  %v321_v29 = vld [vmem:[%s1082_s3] sm:$0xff] }
  0x57   : > { %v290_v33 = vadd.f32 %v289_v31, %v884_v30 }
  0x59   : > { %v291_v35 = vadd.f32 %v290_v33, %v888_v32 }
  0x5b   : > { %v292_v37 = vadd.f32 %v291_v35, %v892_v34 }
  0x5d   : > { %v293_v39 = vadd.f32 %v292_v37, %v896_v36 }
  0x5f   : > { %v294_v41 = vadd.f32 %v293_v39, %v900_v38 }
  0x61   : > { %v295_v43 = vadd.f32 %v294_v41, %v904_v40 }
  0x63   : > { %v296_v45 = vadd.f32 %v295_v43, %v908_v42 }
  0x65   : > { %v297_v47 = vadd.f32 %v296_v45, %v912_v44  ;;  %v334_v45 = vld [vmem:[%s1083_s4] sm:$0x1] }
  0x67   : > { %v298_v49 = vadd.f32 %v297_v47, %v916_v46 }
  0x69   : > { %v299_v51 = vadd.f32 %v298_v49, %v920_v48 }
  0x6b   : > { %v300_v53 = vadd.f32 %v299_v51, %v924_v50 }
  0x6d   : > { %v301_v55 = vadd.f32 %v300_v53, %v928_v52 }
  0x6f   : > { %v302_v57 = vadd.f32 %v301_v55, %v932_v54 }
  0x71   : > { %v303_v59 = vadd.f32 %v302_v57, %v936_v56 }
  0x73   : > { %v304_v61 = vadd.f32 %v303_v59, %v940_v58  ;;  %v342_v59 = vlaneseq }
  0x75   : > { %v305_v62 = vadd.f32 %v304_v61, %v944_v60  ;;  %v343_v61 = vshrl.u32 %v342_v59, 7 }
  0x77   : > { %v306_v63 = vrot.slane %v305_v62, 4 }
  0x79   : > { %v307_v3 = vadd.f32 %v306_v63, %v305_v62  ;;  %v344_v62 = vsub.s32 0, %v343_v61 }
  0x7b   : > { %v308_v5 = vrot.slane %v307_v3, 2 }
  0x7d   : > { %v309_v7 = vadd.f32 %v308_v5, %v307_v3 }
  0x7f   : > { %v310_v9 = vrot.slane %v309_v7, 1 }
  0x81   : > { %v311_v11 = vadd.f32 %v310_v9, %v309_v7 }
  0x83   : > { %v313_v15 = vmul.f32 0.00390625, %v311_v11 }
  0x85   : > { %v315_v17 = vmul.f32 %v314_v13, %v313_v15 }
  0x87   : > { %316 = vadd.xlane.f32.xlu0 %v315_v17 }
 0x114   : > { %v317_v23 = vpop.xlane.xlu0 %316 }
 0x115   : > { %v319_v25 = vadd.f32 %v318_v21, %v317_v23 }
 0x117   : > { %v320_v27 = vmax.f32 %v319_v25, 0.0 }
 0x119   : > { %324 = vperm.xlu0 %564, %v320_v27  }
 0x198   : > { %v325_v31 = vpop.permute.xlu0 %324 }
 0x199   : > { %v327_v33 = vmul.f32 %v325_v31, %v321_v29 }
 0x19b   : > { %v328_v35 = vrot.slane %v327_v33, 4 }
 0x19d   : > { %v329_v37 = vadd.f32 %v328_v35, %v327_v33 }
 0x19f   : > { %v330_v39 = vrot.slane %v329_v37, 2 }
 0x1a1   : > { %v331_v41 = vadd.f32 %v330_v39, %v329_v37 }
 0x1a3   : > { %v332_v43 = vrot.slane %v331_v41, 1 }
 0x1a5   : > { %v333_v47 = vadd.f32 %v332_v43, %v331_v41 }
 0x1a7   : > { %v335_v49 = vadd.f32 %v334_v45, %v333_v47 }
 0x1a9   : > { %v336_v51 = vsub.f32 0.0, %v335_v49 }
 0x1ab   : > { %v337_v53 = vmul.f32 1.442695, %v336_v51 }
 0x1ad   : > { %565 = vpow2.f32 %v337_v53 }
 0x1b7   : > { %v566_v55 = vpop.eup %565 }
 0x1b8   : > { %v339_v57 = vadd.f32 1.0, %v566_v55 }
 0x1ba   : > { %567 = vrcp.f32 %v339_v57 }
 0x1c4   : > { %v568_v63 = vpop.eup %567 }
 0x1c5   : > { %v345_v3 = vrot.slane %v568_v63, %v344_v62 }
 0x1c7   : > { %v346_v5 = vmul.f32 %v345_v3, %v821_v0  ;;  %v347_v7 = vmul.f32 %v345_v3, %v824_v1  ;;  %v348_v9 = vmul.f32 %v345_v3, %v827_v2  ;;  %v349_v11 = vmul.f32 %v345_v3, %v832_v4 }
 0x1c8   : > { %v350_v13 = vmul.f32 %v345_v3, %v836_v6  ;;  %v351_v15 = vmul.f32 %v345_v3, %v840_v8  ;;  %v352_v17 = vmul.f32 %v345_v3, %v844_v10  ;;  %v353_v19 = vmul.f32 %v345_v3, %v848_v12 }
 0x1c9   : > { %v354_v21 = vmul.f32 %v345_v3, %v852_v14  ;;  %v355_v23 = vmul.f32 %v345_v3, %v856_v16  ;;  %v356_v0 = vmul.f32 %v345_v3, %v860_v18  ;;  %v357_v1 = vmul.f32 %v345_v3, %v864_v20  ;;  %378 = vst [vmem:[%s974_s10] sm:$0xff] %v346_v5 }
 0x1ca   : > { %379 = vst [vmem:[%s974_s10 + $0x8] sm:$0xff] %v347_v7  ;;  %380 = vst [vmem:[%s974_s10 + $0x10] sm:$0xff] %v348_v9  ;;  %v358_v2 = vmul.f32 %v345_v3, %v868_v22  ;;  %v359_v4 = vmul.f32 %v345_v3, %v872_v24  ;;  %v360_v6 = vmul.f32 %v345_v3, %v876_v26 }
 0x1cb   : > { %381 = vst [vmem:[%s974_s10 + $0x18] sm:$0xff] %v349_v11  ;;  %v361_v8 = vmul.f32 %v345_v3, %v880_v28  ;;  %382 = vst [vmem:[%s974_s10 + $0x20] sm:$0xff] %v350_v13  ;;  %v362_v10 = vmul.f32 %v345_v3, %v884_v30  ;;  %v363_v12 = vmul.f32 %v345_v3, %v888_v32 }
 0x1cc   : > { %383 = vst [vmem:[%s974_s10 + $0x28] sm:$0xff] %v351_v15  ;;  %384 = vst [vmem:[%s974_s10 + $0x30] sm:$0xff] %v352_v17  ;;  %v364_v14 = vmul.f32 %v345_v3, %v892_v34  ;;  %v365_v16 = vmul.f32 %v345_v3, %v896_v36  ;;  %v366_v18 = vmul.f32 %v345_v3, %v900_v38 }
 0x1cd   : > { %385 = vst [vmem:[%s974_s10 + $0x38] sm:$0xff] %v353_v19  ;;  %386 = vst [vmem:[%s974_s10 + $0x40] sm:$0xff] %v354_v21  ;;  %v367_v20 = vmul.f32 %v345_v3, %v904_v40  ;;  %v368_v22 = vmul.f32 %v345_v3, %v908_v42  ;;  %v369_v24 = vmul.f32 %v345_v3, %v912_v44 }
 0x1ce   : > { %387 = vst [vmem:[%s974_s10 + $0x48] sm:$0xff] %v355_v23  ;;  %388 = vst [vmem:[%s974_s10 + $0x50] sm:$0xff] %v356_v0  ;;  %v370_v26 = vmul.f32 %v345_v3, %v916_v46  ;;  %v371_v28 = vmul.f32 %v345_v3, %v920_v48  ;;  %v372_v30 = vmul.f32 %v345_v3, %v924_v50 }
 0x1cf   : > { %389 = vst [vmem:[%s974_s10 + $0x58] sm:$0xff] %v357_v1  ;;  %390 = vst [vmem:[%s974_s10 + $0x60] sm:$0xff] %v358_v2  ;;  %v373_v32 = vmul.f32 %v345_v3, %v928_v52  ;;  %v374_v34 = vmul.f32 %v345_v3, %v932_v54  ;;  %v375_v36 = vmul.f32 %v345_v3, %v936_v56 }
 0x1d0   : > { %391 = vst [vmem:[%s974_s10 + $0x68] sm:$0xff] %v359_v4  ;;  %392 = vst [vmem:[%s974_s10 + $0x70] sm:$0xff] %v360_v6  ;;  %v376_v38 = vmul.f32 %v345_v3, %v940_v58  ;;  %v377_v40 = vmul.f32 %v345_v3, %v944_v60 }
 0x1d1   : > { %393 = vst [vmem:[%s974_s10 + $0x78] sm:$0xff] %v361_v8  ;;  %394 = vst [vmem:[%s974_s10 + $0x80] sm:$0xff] %v362_v10 }
 0x1d2   : > { %395 = vst [vmem:[%s974_s10 + $0x88] sm:$0xff] %v363_v12  ;;  %396 = vst [vmem:[%s974_s10 + $0x90] sm:$0xff] %v364_v14 }
 0x1d3   : > { %397 = vst [vmem:[%s974_s10 + $0x98] sm:$0xff] %v365_v16  ;;  %398 = vst [vmem:[%s974_s10 + $0xa0] sm:$0xff] %v366_v18 }
 0x1d4   : > { %399 = vst [vmem:[%s974_s10 + $0xa8] sm:$0xff] %v367_v20  ;;  %400 = vst [vmem:[%s974_s10 + $0xb0] sm:$0xff] %v368_v22 }
 0x1d5   : > { %401 = vst [vmem:[%s974_s10 + $0xb8] sm:$0xff] %v369_v24  ;;  %402 = vst [vmem:[%s974_s10 + $0xc0] sm:$0xff] %v370_v26 }
 0x1d6   : > { %403 = vst [vmem:[%s974_s10 + $0xc8] sm:$0xff] %v371_v28  ;;  %404 = vst [vmem:[%s974_s10 + $0xd0] sm:$0xff] %v372_v30 }
 0x1d7   : > { %405 = vst [vmem:[%s974_s10 + $0xd8] sm:$0xff] %v373_v32  ;;  %406 = vst [vmem:[%s974_s10 + $0xe0] sm:$0xff] %v374_v34 }
 0x1d8   : > { %407 = vst [vmem:[%s974_s10 + $0xe8] sm:$0xff] %v375_v36  ;;  %408 = vst [vmem:[%s974_s10 + $0xf0] sm:$0xff] %v376_v38 }
 0x1d9   : > { %409 = vst [vmem:[%s974_s10 + $0xf8] sm:$0xff] %v377_v40 }
 0x1da   : > { %612 = shalt.err (!%p609_p2)
}
 0x1db   : > { %s613_s15 = scalar_lea.hbm %s1017_s25, 4096  ;;  %s617_s7 = scalar_lea.hbm %s1084_s5, 8192 }
 0x1dc   : > { %p614_p4 = scmp.ne.s32.totalorder %s1017_s25, %s613_s15  ;;  %p618_p9 = scmp.lt.u32.totalorder %s1017_s25, %s1084_s5 }
 0x1dd   : > { %p619_p1 = scmp.lt.u32.totalorder %s617_s7, %s613_s15  ;;  %p621_p6 = scmp.lt.u32.totalorder %s613_s15, %s1017_s25 }
 0x1de   : > { %p615_p5 = pnand %p614_p4, %p1091_p11 }
 0x1df   : > { %p620_p3 = por %p619_p1, %p618_p9 }
 0x1e0   : > { %p616_p7 = pneg %p615_p5 }
 0x1e1   : > { %p622_p12 = por %p621_p6, %p620_p3 }
 0x1e3   : > { %p623_p13 = pnand %p622_p12, %p616_p7 }
 0x1e5   : > { %626 = shalt.err (!%p623_p13)
}
 0x1e6   : > { %s672_s11 = smov 128   ;;  %s673_s22 = smov 8  }
 0x1e7   : > { %515 = dma.vmem_to_hbm [thread:$0]  (%p1091_p11), %s1019_s13, 4096, %s1017_s25, %s411_s26, %s672_s11, %s672_s11, %s673_s22  }
 0x1e8 PF: > { %s439_s17 = sand.u32 1, %s653_s18   ;;  %p1092_p8 = scmp.ne.s32.totalorder %s1089_s6, 0 }
 0x1e9   : > { %p1093_p10 = scmp.ge.s32.totalorder %s665_s21, 2  ;;  %s440_s28 = scalar_lea.sflag [#allocation4], %s439_s17 }
 0x1eb   : > { %p522_p0 = pnand %p1093_p10, %p1092_p8 }
 0x1ed   : > { %648 = dma.done.wait (!%p522_p0), %s440_s28, 4096  }
 0x1ee   : > { %650 = vsyncadd (!%p522_p0), %s440_s28, 4294963200  ;;  %p18_p2 = scmp.ge.s32.totalorder %s729_s24, 4   ;;  %s1094_s18 = smov %s657_s19 }
 0x1ef   : > { %s1095_s19 = smov %s661_s20  ;;  %s1096_s20 = smov %s741_s27 }
 0x1f0   : > { %s1097_s21 = smov %s729_s24  ;;  %20 = sbr.rel (!%p18_p2) target bundleno = 5 (0x5), region = 85 }
 0x1f7   :  { %445 = vsyncpa [#allocation3], 1 }
 0x1f8   :  { %447 = vsyncpa [#allocation3 + $0x1], 1 }
 0x1f9   :  { %448 = vsyncpa [#allocation4], 1 }
 0x1fa   :  { %450 = vsyncpa [#allocation4 + $0x1], 1 }

</bundles_post_ra>
